<compile_context>
chip_gen: v5e
topology: v5e:2x2
jax: 0.10.0
libtpu: 0.0.40
codegen_flags: <defaults>
</compile_context>

<pallas_src>
import jax
import jax.numpy as jnp
from jax.experimental import pallas as pl
from jax.experimental.pallas import tpu as pltpu

BN_EPS = 1e-5


def _make_kernel(N, D, F, C):
    inv_n = 1.0 / float(N)

    def kernel(slab_ref, out_ref):
        S = slab_ref[...]                       # single fused input slab

        # ---- static unpack (zero-cost value slices of one VMEM load) ----
        r = 0
        x = S[r:r + N, 0:D]; r += N             # input batch
        w1 = S[r:r + D, 0:D]; r += D            # Linear(D,D)
        w2 = S[r:r + D, 0:F]; r += D            # Linear(D,F)
        w3 = S[r:r + F, 0:F]; r += F            # Linear(F,F)
        wc = S[r:r + F, 0:C]; r += F            # cluster Linear(F,C)
        g1, be1 = S[r + 0:r + 1, 0:D], S[r + 1:r + 2, 0:D]
        g2, be2 = S[r + 2:r + 3, 0:F], S[r + 3:r + 4, 0:F]
        g3, be3 = S[r + 4:r + 5, 0:F], S[r + 5:r + 6, 0:F]
        bc = S[r + 6:r + 7, 0:C]

        def lin_bn_relu(h_in, w, gamma, beta):
            # Linear bias omitted: a constant added before batch-stat BN is
            # exactly cancelled by the mean subtraction (training-mode BN).
            h = jnp.dot(h_in, w, preferred_element_type=jnp.float32)
            # One-pass batch statistics (biased variance, training-mode BN).
            s1 = jnp.sum(h, axis=0, keepdims=True)
            s2 = jnp.sum(h * h, axis=0, keepdims=True)
            mean = s1 * inv_n
            var = jnp.maximum(s2 * inv_n - mean * mean, 0.0)   # cancellation guard
            # Fold BN affine into a single scale/shift (2 VPU ops per element).
            scale = gamma * jax.lax.rsqrt(var + BN_EPS)
            shift = beta - mean * scale
            return jnp.maximum(h * scale + shift, 0.0)

        h = lin_bn_relu(x, w1, g1, be1)
        h = lin_bn_relu(h, w2, g2, be2)
        feat = lin_bn_relu(h, w3, g3, be3)

        # TODO(synk): flag=True would add the `fea` residual to feat here.

        # Cluster head: Linear(F,C) + softmax over dim=1.
        logits = jnp.dot(feat, wc, preferred_element_type=jnp.float32) + bc
        m = jnp.max(logits, axis=1, keepdims=True)
        e = jnp.exp(logits - m)
        denom = jnp.sum(e, axis=1, keepdims=True)
        inv = pl.reciprocal(denom, approx=True)     # EUP slot (nearly free)
        inv = inv * (2.0 - denom * inv)             # one Newton step -> f32-exact
        clus = e * inv

        # ---- single fused output slab: rows 0:N feat, rows N:2N clus ----
        out_ref[0:N, 0:F] = feat.astype(out_ref.dtype)
        out_ref[N:2 * N, 0:C] = clus.astype(out_ref.dtype)

    return kernel


def pack_param_slab(params):
    """Pack the 11 used parameter arrays into one row-stacked slab.

    Rows: w1 (D) | w2 (D) | w3 (F) | wc (F) | g1, be1, g2, be2, g3, be3, bc
    (+ zero pad to a sublane-aligned row count). All rows zero-padded to a
    common column width cols = max(D, F, C); everything stays lane-0 aligned.
    """
    w1, w3, wc = params["w1"], params["w3"], params["wc"]
    D, F, C = w1.shape[0], w3.shape[0], wc.shape[1]
    cols = max(D, F, C)

    def padc(a):
        a = jnp.reshape(a, (-1, a.shape[-1])).astype(jnp.float32)
        return jnp.pad(a, ((0, 0), (0, cols - a.shape[-1])))

    rows = [padc(params["w1"]), padc(params["w2"]),
            padc(params["w3"]), padc(params["wc"]),
            padc(params["g1"]), padc(params["be1"]),
            padc(params["g2"]), padc(params["be2"]),
            padc(params["g3"]), padc(params["be3"]),
            padc(params["bc"])]
    slab = jnp.concatenate(rows, axis=0)
    pad_rows = (-slab.shape[0]) % 8                 # sublane-align row count
    if pad_rows:
        slab = jnp.pad(slab, ((0, pad_rows), (0, 0)))
    return slab


def model2_forward(x, param_slab, data_dim, feature_dim, cluster_num):
    """Fused Model_2 forward pass (flag=False path)."""
    N = x.shape[0]
    D, F, C = data_dim, feature_dim, cluster_num
    cols = param_slab.shape[1]
    Fo = max(F, C)

    # One input slab: x rows on top of the (constant) parameter rows.
    x_pad = jnp.pad(x.astype(jnp.float32), ((0, 0), (0, cols - D)))
    slab = jnp.concatenate([x_pad, param_slab], axis=0)

    kernel = _make_kernel(N, D, F, C)

    flops = 2 * N * (D * D + D * F + F * F + F * C)
    transcendentals = D + 2 * F + N * C            # rsqrt + exp (+ recip)
    bytes_accessed = 4 * (int(slab.size) + 2 * N * Fo)

    out = pl.pallas_call(
        kernel,
        out_shape=jax.ShapeDtypeStruct((2 * N, Fo), jnp.float32),
        in_specs=[pl.BlockSpec(memory_space=pltpu.VMEM)],
        out_specs=pl.BlockSpec(memory_space=pltpu.VMEM),
        cost_estimate=pl.CostEstimate(flops=flops,
                                      transcendentals=transcendentals,
                                      bytes_accessed=bytes_accessed),
    )(slab)

    feat = out[:N, :F]                              # free slices in the wrapper
    clus = out[N:, :C]
    return feat, clus


def init_params(key, data_dim, feature_dim, cluster_num):
    """Matches _initialize_weights: Linear weight ~ N(0, 0.02), bias = 0;
    BN gamma = 1, beta = 0. Weights stored transposed as [in, out]."""
    ks = jax.random.split(key, 4)
    std = 0.02

    def lin(k, din, dout):
        w = std * jax.random.normal(k, (din, dout), dtype=jnp.float32)
        b = jnp.zeros((1, dout), dtype=jnp.float32)
        return w, b

    def bn(dim):
        return jnp.ones((1, dim), jnp.float32), jnp.zeros((1, dim), jnp.float32)

    w1, b1 = lin(ks[0], data_dim, data_dim)
    g1, be1 = bn(data_dim)
    w2, b2 = lin(ks[1], data_dim, feature_dim)
    g2, be2 = bn(feature_dim)
    w3, b3 = lin(ks[2], feature_dim, feature_dim)
    g3, be3 = bn(feature_dim)
    wc, bc = lin(ks[3], feature_dim, cluster_num)

    return dict(w1=w1, b1=b1, g1=g1, be1=be1,
                w2=w2, b2=b2, g2=g2, be2=be2,
                w3=w3, b3=b3, g3=g3, be3=be3,
                wc=wc, bc=bc)


def _reference(x, p):
    """Pure-JAX reference (full math, including the pre-BN biases)."""
    def lbr(h, w, b, g, be):
        h = h @ w + b
        mean = jnp.mean(h, axis=0, keepdims=True)
        var = jnp.mean((h - mean) ** 2, axis=0, keepdims=True)
        h = (h - mean) / jnp.sqrt(var + BN_EPS) * g + be
        return jnp.maximum(h, 0.0)

    h = lbr(x, p["w1"], p["b1"], p["g1"], p["be1"])
    h = lbr(h, p["w2"], p["b2"], p["g2"], p["be2"])
    feat = lbr(h, p["w3"], p["b3"], p["g3"], p["be3"])
    logits = feat @ p["wc"] + p["bc"]
    return feat, jax.nn.softmax(logits, axis=1)


if __name__ == "__main__":
    batch, data_dim, feature_dim, cluster_num = 8, 32, 16, 4

    key = jax.random.PRNGKey(0)
    k_x, k_p = jax.random.split(key)
    x = jax.random.normal(k_x, (batch, data_dim), dtype=jnp.float32)
    params = init_params(k_p, data_dim, feature_dim, cluster_num)
    param_slab = pack_param_slab(params)

    feat, clus = model2_forward(x, param_slab,
                                data_dim, feature_dim, cluster_num)
    jax.block_until_ready((feat, clus))

    feat_ref, clus_ref = _reference(x, params)
    assert feat.shape == (batch, feature_dim)
    assert clus.shape == (batch, cluster_num)
    assert jnp.allclose(feat, feat_ref, atol=1e-4, rtol=1e-4)
    assert jnp.allclose(clus, clus_ref, atol=1e-4, rtol=1e-4)

    print("KERNEL_OK")
</pallas_src>

<mosaic_0001>
module attributes {stable_mosaic.version = 11 : i64} {
  func.func @kernel(%arg0: memref<112x32xf32, #tpu.memory_space<vmem>>, %arg1: memref<16x16xf32, #tpu.memory_space<vmem>>) attributes {dimension_semantics = [], scalar_prefetch = 0 : i64, scratch_operands = 0 : i64, tpu.core_type = #tpu.core_type<tc>} {
    %c0 = arith.constant 0 : index
    %c0_0 = arith.constant 0 : index
    %0 = vector.load %arg0[%c0, %c0_0] : memref<112x32xf32, #tpu.memory_space<vmem>>, vector<112x32xf32>
    %1 = vector.extract_strided_slice %0 {offsets = [0, 0], sizes = [8, 32], strides = [1, 1]} : vector<112x32xf32> to vector<8x32xf32>
    %2 = vector.extract_strided_slice %0 {offsets = [8, 0], sizes = [32, 32], strides = [1, 1]} : vector<112x32xf32> to vector<32x32xf32>
    %3 = vector.extract_strided_slice %0 {offsets = [40, 0], sizes = [32, 16], strides = [1, 1]} : vector<112x32xf32> to vector<32x16xf32>
    %4 = vector.extract_strided_slice %0 {offsets = [72, 0], sizes = [16, 16], strides = [1, 1]} : vector<112x32xf32> to vector<16x16xf32>
    %5 = vector.extract_strided_slice %0 {offsets = [88, 0], sizes = [16, 4], strides = [1, 1]} : vector<112x32xf32> to vector<16x4xf32>
    %6 = vector.extract_strided_slice %0 {offsets = [104, 0], sizes = [1, 32], strides = [1, 1]} : vector<112x32xf32> to vector<1x32xf32>
    %7 = vector.extract_strided_slice %0 {offsets = [105, 0], sizes = [1, 32], strides = [1, 1]} : vector<112x32xf32> to vector<1x32xf32>
    %8 = vector.extract_strided_slice %0 {offsets = [106, 0], sizes = [1, 16], strides = [1, 1]} : vector<112x32xf32> to vector<1x16xf32>
    %9 = vector.extract_strided_slice %0 {offsets = [107, 0], sizes = [1, 16], strides = [1, 1]} : vector<112x32xf32> to vector<1x16xf32>
    %10 = vector.extract_strided_slice %0 {offsets = [108, 0], sizes = [1, 16], strides = [1, 1]} : vector<112x32xf32> to vector<1x16xf32>
    %11 = vector.extract_strided_slice %0 {offsets = [109, 0], sizes = [1, 16], strides = [1, 1]} : vector<112x32xf32> to vector<1x16xf32>
    %12 = vector.extract_strided_slice %0 {offsets = [110, 0], sizes = [1, 4], strides = [1, 1]} : vector<112x32xf32> to vector<1x4xf32>
    %cst = arith.constant dense<0.000000e+00> : vector<8x32xf32>
    %13 = tpu.matmul %1, %2, %cst {dimension_numbers = #tpu.dot_dimension_numbers<[1], [0], [0], [1], [0, 0, 1, 1], [], []>} : vector<8x32xf32>, vector<32x32xf32>, vector<8x32xf32> -> vector<8x32xf32>
    %cst_1 = arith.constant dense<0.000000e+00> : vector<32xf32>
    %14 = vector.multi_reduction <add>, %13, %cst_1 [0] : vector<8x32xf32> to vector<32xf32>
    %15 = vector.shape_cast %14 : vector<32xf32> to vector<1x32xf32>
    %16 = arith.mulf %13, %13 : vector<8x32xf32>
    %cst_2 = arith.constant dense<0.000000e+00> : vector<32xf32>
    %17 = vector.multi_reduction <add>, %16, %cst_2 [0] : vector<8x32xf32> to vector<32xf32>
    %18 = vector.shape_cast %17 : vector<32xf32> to vector<1x32xf32>
    %cst_3 = arith.constant 1.250000e-01 : f32
    %19 = vector.broadcast %cst_3 : f32 to vector<1x32xf32>
    %20 = arith.mulf %15, %19 : vector<1x32xf32>
    %cst_4 = arith.constant 1.250000e-01 : f32
    %21 = vector.broadcast %cst_4 : f32 to vector<1x32xf32>
    %22 = arith.mulf %18, %21 : vector<1x32xf32>
    %23 = arith.mulf %20, %20 : vector<1x32xf32>
    %24 = arith.subf %22, %23 : vector<1x32xf32>
    %cst_5 = arith.constant 0.000000e+00 : f32
    %25 = vector.broadcast %cst_5 : f32 to vector<1x32xf32>
    %26 = arith.maximumf %24, %25 : vector<1x32xf32>
    %cst_6 = arith.constant 9.99999974E-6 : f32
    %27 = vector.broadcast %cst_6 : f32 to vector<1x32xf32>
    %28 = arith.addf %26, %27 : vector<1x32xf32>
    %29 = math.rsqrt %28 : vector<1x32xf32>
    %30 = arith.mulf %6, %29 : vector<1x32xf32>
    %31 = arith.mulf %20, %30 : vector<1x32xf32>
    %32 = arith.subf %7, %31 : vector<1x32xf32>
    %33 = vector.broadcast %30 : vector<1x32xf32> to vector<8x32xf32>
    %34 = arith.mulf %13, %33 : vector<8x32xf32>
    %35 = vector.broadcast %32 : vector<1x32xf32> to vector<8x32xf32>
    %36 = arith.addf %34, %35 : vector<8x32xf32>
    %cst_7 = arith.constant 0.000000e+00 : f32
    %37 = vector.broadcast %cst_7 : f32 to vector<8x32xf32>
    %38 = arith.maximumf %36, %37 : vector<8x32xf32>
    %cst_8 = arith.constant dense<0.000000e+00> : vector<8x16xf32>
    %39 = tpu.matmul %38, %3, %cst_8 {dimension_numbers = #tpu.dot_dimension_numbers<[1], [0], [0], [1], [0, 0, 1, 1], [], []>} : vector<8x32xf32>, vector<32x16xf32>, vector<8x16xf32> -> vector<8x16xf32>
    %cst_9 = arith.constant dense<0.000000e+00> : vector<16xf32>
    %40 = vector.multi_reduction <add>, %39, %cst_9 [0] : vector<8x16xf32> to vector<16xf32>
    %41 = vector.shape_cast %40 : vector<16xf32> to vector<1x16xf32>
    %42 = arith.mulf %39, %39 : vector<8x16xf32>
    %cst_10 = arith.constant dense<0.000000e+00> : vector<16xf32>
    %43 = vector.multi_reduction <add>, %42, %cst_10 [0] : vector<8x16xf32> to vector<16xf32>
    %44 = vector.shape_cast %43 : vector<16xf32> to vector<1x16xf32>
    %cst_11 = arith.constant 1.250000e-01 : f32
    %45 = vector.broadcast %cst_11 : f32 to vector<1x16xf32>
    %46 = arith.mulf %41, %45 : vector<1x16xf32>
    %cst_12 = arith.constant 1.250000e-01 : f32
    %47 = vector.broadcast %cst_12 : f32 to vector<1x16xf32>
    %48 = arith.mulf %44, %47 : vector<1x16xf32>
    %49 = arith.mulf %46, %46 : vector<1x16xf32>
    %50 = arith.subf %48, %49 : vector<1x16xf32>
    %cst_13 = arith.constant 0.000000e+00 : f32
    %51 = vector.broadcast %cst_13 : f32 to vector<1x16xf32>
    %52 = arith.maximumf %50, %51 : vector<1x16xf32>
    %cst_14 = arith.constant 9.99999974E-6 : f32
    %53 = vector.broadcast %cst_14 : f32 to vector<1x16xf32>
    %54 = arith.addf %52, %53 : vector<1x16xf32>
    %55 = math.rsqrt %54 : vector<1x16xf32>
    %56 = arith.mulf %8, %55 : vector<1x16xf32>
    %57 = arith.mulf %46, %56 : vector<1x16xf32>
    %58 = arith.subf %9, %57 : vector<1x16xf32>
    %59 = vector.broadcast %56 : vector<1x16xf32> to vector<8x16xf32>
    %60 = arith.mulf %39, %59 : vector<8x16xf32>
    %61 = vector.broadcast %58 : vector<1x16xf32> to vector<8x16xf32>
    %62 = arith.addf %60, %61 : vector<8x16xf32>
    %cst_15 = arith.constant 0.000000e+00 : f32
    %63 = vector.broadcast %cst_15 : f32 to vector<8x16xf32>
    %64 = arith.maximumf %62, %63 : vector<8x16xf32>
    %cst_16 = arith.constant dense<0.000000e+00> : vector<8x16xf32>
    %65 = tpu.matmul %64, %4, %cst_16 {dimension_numbers = #tpu.dot_dimension_numbers<[1], [0], [0], [1], [0, 0, 1, 1], [], []>} : vector<8x16xf32>, vector<16x16xf32>, vector<8x16xf32> -> vector<8x16xf32>
    %cst_17 = arith.constant dense<0.000000e+00> : vector<16xf32>
    %66 = vector.multi_reduction <add>, %65, %cst_17 [0] : vector<8x16xf32> to vector<16xf32>
    %67 = vector.shape_cast %66 : vector<16xf32> to vector<1x16xf32>
    %68 = arith.mulf %65, %65 : vector<8x16xf32>
    %cst_18 = arith.constant dense<0.000000e+00> : vector<16xf32>
    %69 = vector.multi_reduction <add>, %68, %cst_18 [0] : vector<8x16xf32> to vector<16xf32>
    %70 = vector.shape_cast %69 : vector<16xf32> to vector<1x16xf32>
    %cst_19 = arith.constant 1.250000e-01 : f32
    %71 = vector.broadcast %cst_19 : f32 to vector<1x16xf32>
    %72 = arith.mulf %67, %71 : vector<1x16xf32>
    %cst_20 = arith.constant 1.250000e-01 : f32
    %73 = vector.broadcast %cst_20 : f32 to vector<1x16xf32>
    %74 = arith.mulf %70, %73 : vector<1x16xf32>
    %75 = arith.mulf %72, %72 : vector<1x16xf32>
    %76 = arith.subf %74, %75 : vector<1x16xf32>
    %cst_21 = arith.constant 0.000000e+00 : f32
    %77 = vector.broadcast %cst_21 : f32 to vector<1x16xf32>
    %78 = arith.maximumf %76, %77 : vector<1x16xf32>
    %cst_22 = arith.constant 9.99999974E-6 : f32
    %79 = vector.broadcast %cst_22 : f32 to vector<1x16xf32>
    %80 = arith.addf %78, %79 : vector<1x16xf32>
    %81 = math.rsqrt %80 : vector<1x16xf32>
    %82 = arith.mulf %10, %81 : vector<1x16xf32>
    %83 = arith.mulf %72, %82 : vector<1x16xf32>
    %84 = arith.subf %11, %83 : vector<1x16xf32>
    %85 = vector.broadcast %82 : vector<1x16xf32> to vector<8x16xf32>
    %86 = arith.mulf %65, %85 : vector<8x16xf32>
    %87 = vector.broadcast %84 : vector<1x16xf32> to vector<8x16xf32>
    %88 = arith.addf %86, %87 : vector<8x16xf32>
    %cst_23 = arith.constant 0.000000e+00 : f32
    %89 = vector.broadcast %cst_23 : f32 to vector<8x16xf32>
    %90 = arith.maximumf %88, %89 : vector<8x16xf32>
    %cst_24 = arith.constant dense<0.000000e+00> : vector<8x4xf32>
    %91 = tpu.matmul %90, %5, %cst_24 {dimension_numbers = #tpu.dot_dimension_numbers<[1], [0], [0], [1], [0, 0, 1, 1], [], []>} : vector<8x16xf32>, vector<16x4xf32>, vector<8x4xf32> -> vector<8x4xf32>
    %92 = vector.broadcast %12 : vector<1x4xf32> to vector<8x4xf32>
    %93 = arith.addf %91, %92 : vector<8x4xf32>
    %cst_25 = arith.constant dense<0xFF800000> : vector<8xf32>
    %94 = vector.multi_reduction <maximumf>, %93, %cst_25 [1] : vector<8x4xf32> to vector<8xf32>
    %95 = vector.shape_cast %94 : vector<8xf32> to vector<8x1xf32>
    %96 = vector.broadcast %95 : vector<8x1xf32> to vector<8x4xf32>
    %97 = arith.subf %93, %96 : vector<8x4xf32>
    %98 = math.exp %97 : vector<8x4xf32>
    %cst_26 = arith.constant dense<0.000000e+00> : vector<8xf32>
    %99 = vector.multi_reduction <add>, %98, %cst_26 [1] : vector<8x4xf32> to vector<8xf32>
    %100 = vector.shape_cast %99 : vector<8xf32> to vector<8x1xf32>
    %101 = tpu.reciprocal %100 {approx = true} : vector<8x1xf32> -> vector<8x1xf32>
    %102 = arith.mulf %100, %101 : vector<8x1xf32>
    %cst_27 = arith.constant 2.000000e+00 : f32
    %103 = vector.broadcast %cst_27 : f32 to vector<8x1xf32>
    %104 = arith.subf %103, %102 : vector<8x1xf32>
    %105 = arith.mulf %101, %104 : vector<8x1xf32>
    %106 = vector.broadcast %105 : vector<8x1xf32> to vector<8x4xf32>
    %107 = arith.mulf %98, %106 : vector<8x4xf32>
    %c0_28 = arith.constant 0 : index
    %c0_29 = arith.constant 0 : index
    %108 = vector.load %arg1[%c0_28, %c0_29] : memref<16x16xf32, #tpu.memory_space<vmem>>, vector<8x16xf32>
    tpu.vector_store %arg1[%c0_28, %c0_29], %90 {strides = array<i32>} : memref<16x16xf32, #tpu.memory_space<vmem>>, vector<8x16xf32>,
    %c8 = arith.constant 8 : index
    %c0_30 = arith.constant 0 : index
    %109 = vector.load %arg1[%c8, %c0_30] : memref<16x16xf32, #tpu.memory_space<vmem>>, vector<8x4xf32>
    tpu.vector_store %arg1[%c8, %c0_30], %107 {strides = array<i32>} : memref<16x16xf32, #tpu.memory_space<vmem>>, vector<8x4xf32>,
    return
  }
}

</mosaic_0001>

<bundles_post_ra>
// kernel: tpu_custom_call.1
= control target key start
LH: loop header
LB: loop body
LE: loop exit
PB: predicated region body
PF: predicated region fallthrough
CT: control target
= control target key end

     0   :  { %s403_s0 = inlined_call_operand.vmem [shape: f32[112,32], index: 0, kind: input, shape index: {}]   ;;  %s404_s1 = inlined_call_operand.hbm [shape: f32[16,16], index: 1, kind: output, shape index: {}]  }
   0x1   :  { %v13_v0 = vld [vmem:[%s403_s0 + $0x20] sm:$0xff]  ;;  %v12_v1 = vld [vmem:[%s403_s0 + $0x18] sm:$0xff]  ;;  %v11_v2 = vld [vmem:[%s403_s0 + $0x10] sm:$0xff] }
   0x2   :  { %39 = vmatpush.msra.mxu0 %v13_v0 }
   0x3   :  { %6 = vsyncpa [#allocation3], 0  ;;  %v10_v3 = vld [vmem:[%s403_s0 + $0x8] sm:$0xff]  ;;  %v9_v4 = vld [vmem:[%s403_s0] sm:$0xff]  ;;  %vm23_vm0 = vcmask 261120   ;;  %vm112_vm4 = vcmask 130048  }
   0x4   :  { %40 = vmatpush.msra.mxu0 %v12_v1  ;;  %v17_v24 = vld [vmem:[%s403_s0 + $0x40] sm:$0xff]  ;;  %v16_v26 = vld [vmem:[%s403_s0 + $0x38] sm:$0xff]  ;;  %v15_v28 = vld [vmem:[%s403_s0 + $0x30] sm:$0xff]  ;;  %vm244_vm11 = vcmask 31744   ;;  %s267_s8 = sshll.u32 %s404_s1, 4  ;;  %s323_s9 = smov 128   ;;  %s268_s8 = int_to_ptr.hbm [resolvable:$true] %s267_s8 }
   0x5   :  { %104 = vmatpush.msra.mxu1 %v17_v24  ;;  %v14_v29 = vld [vmem:[%s403_s0 + $0x28] sm:$0xff]  ;;  %s324_s10 = smov 8  }
   0x6   :  { %41 = vmatpush.msra.mxu0 %v11_v2  ;;  %v368_v36 = vld [vmem:[%s403_s0 + $0x68] sm:$0xff] }
   0x7   :  { %105 = vmatpush.msra.mxu1 %v16_v26 }
   0x8   :  { %42 = vmatpush.msra.mxu0 %v10_v3 }
   0x9   :  { %279 = vmatmul.msk.f32.vlgmr.msra.gmra.mxu0 %vm23_vm0, %v9_v4  ;;  %106 = vmatpush.msra.mxu1 %v15_v28 }
   0xb   :  { %107 = vmatpush.msra.mxu1 %v14_v29 }
  0x86   :  { %v44_v5 = vpop.f32.mrf.mxu0 }
  0x87   :  { %v47_v6 = vsel %vm23_vm0, %v44_v5, 0.0  ;;  %v54_v7 = vmul.f32 %v44_v5, %v44_v5 }
  0x88   :  { %v48_v8 = vrot.slane %v47_v6, 4 }
  0x89   :  { %v55_v9 = vsel %vm23_vm0, %v54_v7, 0.0 }
  0x8a   :  { %v49_v10 = vadd.f32 %v48_v8, %v47_v6  ;;  %v56_v11 = vrot.slane %v55_v9, 4  ;;  %v18_v6 = vld [vmem:[%s403_s0 + $0x48] sm:$0xff] }
  0x8c   :  { %v50_v12 = vrot.slane %v49_v10, 2  ;;  %v57_v13 = vadd.f32 %v56_v11, %v55_v9 }
  0x8e   :  { %v51_v14 = vadd.f32 %v50_v12, %v49_v10  ;;  %v58_v15 = vrot.slane %v57_v13, 2 }
  0x90   :  { %v52_v16 = vrot.slane %v51_v14, 1  ;;  %v59_v17 = vadd.f32 %v58_v15, %v57_v13 }
  0x92   :  { %v53_v18 = vadd.f32 %v52_v16, %v51_v14  ;;  %v60_v19 = vrot.slane %v59_v17, 1 }
  0x94   :  { %v61_v20 = vadd.f32 %v60_v19, %v59_v17  ;;  %v62_v21 = vmul.f32 0.125, %v53_v18 }
  0x96   :  { %v63_v22 = vmul.f32 0.125, %v61_v20  ;;  %v64_v23 = vmul.f32 %v62_v21, %v62_v21 }
  0x98   :  { %v65_v25 = vsub.f32 %v63_v22, %v64_v23 }
  0x9a   :  { %v66_v27 = vmax.f32 %v65_v25, 0.0 }
  0x9c   :  { %v67_v30 = vadd.f32 1e-05, %v66_v27 }
  0x9e   :  { %286 = vrsqrt.f32 %v67_v30  ;;  %vm74_vm2 = vweird.f32 %v67_v30 }
  0xa4   :  { %v287_v31 = vpop.eup %286 }
  0xa5   :  { %v69_v32 = vmul.f32 %v287_v31, %v67_v30  ;;  %vm75_vm1 = vweird.f32 %v287_v31 }
  0xa6   :  { %vm76_vm3 = vmor %vm74_vm2, %vm75_vm1 }
  0xa7   :  { %v70_v33 = vmul.f32 %v287_v31, %v69_v32 }
  0xa9   :  { %v71_v34 = vmul.f32 0.5, %v70_v33 }
  0xab   :  { %v72_v35 = vsub.f32 1.5, %v71_v34 }
  0xad   :  { %v73_v37 = vmul.f32 %v287_v31, %v72_v35 }
  0xaf   :  { %v77_v38 = vsel %vm76_vm3, %v287_v31, %v73_v37 }
  0xb0   :  { %v78_v39 = vmul.f32 %v77_v38, %v368_v36 }
  0xb2   :  { %v79_v40 = vmul.f32 %v78_v39, %v62_v21  ;;  %v84_v42 = vperm.slane %v78_v39, 0 }
  0xb4   :  { %v81_v41 = vrot.slane %v79_v40, 7  ;;  %v85_v44 = vmul.f32 %v84_v42, %v44_v5  ;;  %v19_v5 = vld [vmem:[%s403_s0 + $0x50] sm:$0xff] }
  0xb5   :  { %172 = vmatpush.msra.mxu2 %v19_v5 }
  0xb6   :  { %v83_v43 = vsub.f32 %v368_v36, %v81_v41 }
  0xb7   :  { %173 = vmatpush.msra.mxu2 %v18_v6 }
  0xb8   :  { %v86_v45 = vperm.slane %v83_v43, 1 }
  0xba   :  { %v87_v46 = vadd.f32 %v86_v45, %v85_v44 }
  0xbc   :  { %v88_v47 = vmax.f32 %v87_v46, 0.0  ;;  %v21_v46 = vld [vmem:[%s403_s0 + $0x60] sm:$0xff] }
  0xbd   :  { %238 = vmatpush.msra.mxu3 %v21_v46 }
  0xbe   :  { %280 = vmatmul.msk.f32.vlgmr.msra.gmra.mxu1 %vm23_vm0, %v88_v47  ;;  %v20_v47 = vld [vmem:[%s403_s0 + $0x58] sm:$0xff]  ;;  %s322_s0 = smov [#allocation2]  }
  0xbf   :  { %239 = vmatpush.msra.mxu3 %v20_v47  ;;  %s265_s5 = sshll.u32 %s322_s0, 4  ;;  %s266_s5 = int_to_ptr.vmem [resolvable:$true] %s265_s5 }
 0x13b   :  { %v109_v48 = vpop.f32.mrf.mxu1 }
 0x13c   :  { %v113_v49 = vsel %vm112_vm4, %v109_v48, 0.0  ;;  %v120_v50 = vmul.f32 %v109_v48, %v109_v48 }
 0x13d   :  { %v114_v51 = vrot.slane %v113_v49, 4 }
 0x13e   :  { %v121_v52 = vsel %vm112_vm4, %v120_v50, 0.0 }
 0x13f   :  { %v115_v53 = vadd.f32 %v114_v51, %v113_v49  ;;  %v122_v54 = vrot.slane %v121_v52, 4 }
 0x141   :  { %v116_v55 = vrot.slane %v115_v53, 2  ;;  %v123_v56 = vadd.f32 %v122_v54, %v121_v52 }
 0x143   :  { %v117_v57 = vadd.f32 %v116_v55, %v115_v53  ;;  %v124_v58 = vrot.slane %v123_v56, 2 }
 0x145   :  { %v118_v59 = vrot.slane %v117_v57, 1  ;;  %v125_v60 = vadd.f32 %v124_v58, %v123_v56 }
 0x147   :  { %v119_v61 = vadd.f32 %v118_v59, %v117_v57  ;;  %v126_v62 = vrot.slane %v125_v60, 1 }
 0x149   :  { %v127_v63 = vadd.f32 %v126_v62, %v125_v60  ;;  %v128_v0 = vmul.f32 0.125, %v119_v61 }
 0x14b   :  { %v129_v1 = vmul.f32 0.125, %v127_v63  ;;  %v130_v2 = vmul.f32 %v128_v0, %v128_v0 }
 0x14d   :  { %v131_v3 = vsub.f32 %v129_v1, %v130_v2  ;;  %v220_v1 = vperm.slane %v368_v36, 6 }
 0x14f   :  { %v132_v4 = vmax.f32 %v131_v3, 0.0 }
 0x151   :  { %v133_v7 = vadd.f32 1e-05, %v132_v4 }
 0x153   :  { %288 = vrsqrt.f32 %v133_v7  ;;  %vm140_vm6 = vweird.f32 %v133_v7 }
 0x159   :  { %v289_v8 = vpop.eup %288 }
 0x15a   :  { %v135_v9 = vmul.f32 %v289_v8, %v133_v7  ;;  %vm141_vm5 = vweird.f32 %v289_v8 }
 0x15b   :  { %vm142_vm7 = vmor %vm140_vm6, %vm141_vm5 }
 0x15c   :  { %v136_v10 = vmul.f32 %v289_v8, %v135_v9 }
 0x15e   :  { %v137_v11 = vmul.f32 0.5, %v136_v10 }
 0x160   :  { %v138_v12 = vsub.f32 1.5, %v137_v11 }
 0x162   :  { %v139_v13 = vmul.f32 %v289_v8, %v138_v12 }
 0x164   :  { %v143_v14 = vsel %vm142_vm7, %v289_v8, %v139_v13 }
 0x165   :  { %v144_v15 = vmul.f32 %v143_v14, %v368_v36 }
 0x167   :  { %v145_v16 = vmul.f32 %v144_v15, %v128_v0  ;;  %v150_v18 = vperm.slane %v144_v15, 2 }
 0x169   :  { %v147_v17 = vrot.slane %v145_v16, 7  ;;  %v151_v20 = vmul.f32 %v150_v18, %v109_v48 }
 0x16b   :  { %v149_v19 = vsub.f32 %v368_v36, %v147_v17 }
 0x16d   :  { %v152_v21 = vperm.slane %v149_v19, 3 }
 0x16f   :  { %v153_v22 = vadd.f32 %v152_v21, %v151_v20 }
 0x171   :  { %v154_v23 = vmax.f32 %v153_v22, 0.0 }
 0x173   :  { %281 = vmatmul.msk.f32.vlgmr.msra.gmra.mxu2 %vm112_vm4, %v154_v23 }
 0x1f6   :  { %v175_v24 = vpop.f32.mrf.mxu2 }
 0x1f7   :  { %v178_v25 = vsel %vm112_vm4, %v175_v24, 0.0  ;;  %v185_v26 = vmul.f32 %v175_v24, %v175_v24 }
 0x1f8   :  { %v179_v27 = vrot.slane %v178_v25, 4 }
 0x1f9   :  { %v186_v28 = vsel %vm112_vm4, %v185_v26, 0.0 }
 0x1fa   :  { %v180_v29 = vadd.f32 %v179_v27, %v178_v25  ;;  %v187_v30 = vrot.slane %v186_v28, 4 }
 0x1fc   :  { %v181_v31 = vrot.slane %v180_v29, 2  ;;  %v188_v32 = vadd.f32 %v187_v30, %v186_v28 }
 0x1fe   :  { %v182_v33 = vadd.f32 %v181_v31, %v180_v29  ;;  %v189_v34 = vrot.slane %v188_v32, 2 }
 0x200   :  { %v183_v35 = vrot.slane %v182_v33, 1  ;;  %v190_v37 = vadd.f32 %v189_v34, %v188_v32 }
 0x202   :  { %v184_v38 = vadd.f32 %v183_v35, %v182_v33  ;;  %v191_v39 = vrot.slane %v190_v37, 1 }
 0x204   :  { %v192_v40 = vadd.f32 %v191_v39, %v190_v37  ;;  %v193_v41 = vmul.f32 0.125, %v184_v38 }
 0x206   :  { %v194_v42 = vmul.f32 0.125, %v192_v40  ;;  %v195_v43 = vmul.f32 %v193_v41, %v193_v41 }
 0x208   :  { %v196_v44 = vsub.f32 %v194_v42, %v195_v43 }
 0x20a   :  { %v197_v45 = vmax.f32 %v196_v44, 0.0 }
 0x20c   :  { %v198_v48 = vadd.f32 1e-05, %v197_v45 }
 0x20e   :  { %290 = vrsqrt.f32 %v198_v48  ;;  %vm205_vm9 = vweird.f32 %v198_v48 }
 0x214   :  { %v291_v49 = vpop.eup %290 }
 0x215   :  { %v200_v50 = vmul.f32 %v291_v49, %v198_v48  ;;  %vm206_vm8 = vweird.f32 %v291_v49 }
 0x216   :  { %vm207_vm10 = vmor %vm205_vm9, %vm206_vm8 }
 0x217   :  { %v201_v51 = vmul.f32 %v291_v49, %v200_v50 }
 0x219   :  { %v202_v52 = vmul.f32 0.5, %v201_v51 }
 0x21b   :  { %v203_v53 = vsub.f32 1.5, %v202_v52 }
 0x21d   :  { %v204_v54 = vmul.f32 %v291_v49, %v203_v53 }
 0x21f   :  { %v208_v55 = vsel %vm207_vm10, %v291_v49, %v204_v54 }
 0x220   :  { %v209_v56 = vmul.f32 %v208_v55, %v368_v36 }
 0x222   :  { %v210_v57 = vmul.f32 %v209_v56, %v193_v41  ;;  %v215_v59 = vperm.slane %v209_v56, 4 }
 0x224   :  { %v212_v58 = vrot.slane %v210_v57, 7  ;;  %v216_v61 = vmul.f32 %v215_v59, %v175_v24 }
 0x226   :  { %v214_v60 = vsub.f32 %v368_v36, %v212_v58 }
 0x228   :  { %v217_v62 = vperm.slane %v214_v60, 5 }
 0x22a   :  { %v218_v63 = vadd.f32 %v217_v62, %v216_v61 }
 0x22c   :  { %v219_v0 = vmax.f32 %v218_v63, 0.0 }
 0x22e   :  { %282 = vmatmul.msk.f32.vlgmr.msra.gmra.mxu3 %vm112_vm4, %v219_v0  ;;  %259 = vst.msk [vmem:[#allocation2] sm:$0xff] %vm112_vm4, %v219_v0 }
 0x2b1   :  { %v241_v2 = vpop.f32.mrf.mxu3 }
 0x2b2   :  { %v242_v3 = vadd.f32 %v241_v2, %v220_v1 }
 0x2b4   :  { %v245_v4 = vsel %vm244_vm11, %v242_v3, -inf }
 0x2b5   :  { %246 = vmax.xlane.f32.xlu0 %v245_v4 }
 0x328   :  { %v247_v5 = vpop.xlane.xlu0 %246 }
 0x329   :  { %v248_v6 = vsub.f32 %v242_v3, %v247_v5 }
 0x32b   :  { %v249_v7 = vmul.f32 1.442695, %v248_v6 }
 0x32d   :  { %292 = vpow2.f32 %v249_v7 }
 0x333   :  { %v293_v8 = vpop.eup %292 }
 0x334   :  { %v251_v9 = vsel %vm244_vm11, %v293_v8, 0.0 }
 0x335   :  { %252 = vadd.xlane.f32.xlu0 %v251_v9 }
 0x3a8   :  { %v253_v10 = vpop.xlane.xlu0 %252 }
 0x3a9   :  { %294 = vrcp.f32 %v253_v10 }
 0x3af   :  { %v295_v11 = vpop.eup %294 }
 0x3b0   :  { %v255_v12 = vmul.f32 %v295_v11, %v253_v10 }
 0x3b2   :  { %v256_v13 = vsub.f32 2.0, %v255_v12 }
 0x3b4   :  { %v257_v36 = vmul.f32 %v295_v11, %v256_v13 }
 0x3b6   :  { %v258_v14 = vmul.f32 %v293_v8, %v257_v36 }
 0x3b8   :  { %260 = vst.msk [vmem:[#allocation2 + $0x8] sm:$0xff] %vm244_vm11, %v258_v14 }
 0x3b9   :  { %273 = dma.vmem_to_hbm [thread:$0]  %s266_s5, 256, %s268_s8, [#allocation3], %s323_s9, %s323_s9, %s324_s10  }
 0x3ba   :  { %320 = dma.done.wait [#allocation3], 256  }
 0x3bb   :  { %321 = vsyncadd [#allocation3], 4294967040 }
 0x3bc   :  { %278 = vsyncpa [#allocation3], 1 }

</bundles_post_ra>
